<compile_context>
chip_gen: v6e
topology: v6e:2x2x1
jax: 0.10.0
libtpu: 0.0.40
codegen_flags: <defaults>
</compile_context>

<pallas_src>
import functools

import jax
import jax.numpy as jnp
from jax.experimental import pallas as pl
from jax.experimental.pallas import tpu as pltpu

LOG_STD_MIN = -20.0
LOG_STD_MAX = 2.0

LANE = 128
SUBLANE = 8


def _round_up(x, m):
    return (x + m - 1) // m * m


def _vmem_tile_bytes(rows, cols, itemsize):
    """Bytes one (rows, cols) array occupies in VMEM after (sublane, lane) padding."""
    sublane = {4: 8, 2: 16, 1: 32}[itemsize]
    return _round_up(max(rows, 1), sublane) * _round_up(max(cols, 1), LANE) * itemsize


def _vmem_budget_bytes():
    """~70% of this generation's physical VMEM (64 MiB v7x, 128 MiB v5e/v6e)."""
    try:
        cap = int(pltpu.get_tpu_info().vmem_capacity_bytes)
    except Exception:
        cap = 64 * 2**20  # conservative v7x floor
    return int(0.7 * cap)


def _actor_fused_kernel(state_ref, w1_ref, b1_ref, w2_ref, b2_ref,
                        wh_ref, bh_ref, lo_ref, hi_ref, out_ref):
    """One batch tile of the actor MLP; weights stay VMEM-resident across tiles."""
    # bf16 MXU operands, f32 accumulation; all elementwise math stays f32
    # (v5e's VPU/EUP have no bf16 datapath).
    x = state_ref[...].astype(jnp.bfloat16)

    h1 = jnp.dot(x, w1_ref[...], preferred_element_type=jnp.float32) + b1_ref[...]
    h1 = jnp.maximum(h1, 0.0)

    h2 = jnp.dot(h1.astype(jnp.bfloat16), w2_ref[...],
                 preferred_element_type=jnp.float32) + b2_ref[...]
    h2 = jnp.maximum(h2, 0.0)

    # Fused heads: single matmul into a lane-dense [mean | log_std | pad] slab.
    heads = jnp.dot(h2.astype(jnp.bfloat16), wh_ref[...],
                    preferred_element_type=jnp.float32) + bh_ref[...]

    # Clamp via resident lo/hi row vectors: mean & pad columns see (-inf, +inf)
    # and pass through untouched; log_std columns clamp to [LOG_STD_MIN, LOG_STD_MAX].
    clamped = jnp.minimum(jnp.maximum(heads, lo_ref[...]), hi_ref[...])
    out_ref[...] = clamped.astype(out_ref.dtype)


@functools.partial(jax.jit, static_argnames=("action_dim", "block_batch"))
def actor_critic_forward(state, params, *, action_dim, block_batch=4096):
    """Pallas-backed equivalent of ActorCritic.forward(state) -> (mean, log_std)."""
    B, S = state.shape
    H_pad = params["w2"].shape[0]
    OUT_pad = params["wh"].shape[1]

    # Only convert unusual dtypes; f32/bf16 inputs are streamed as-is (no extra
    # wrapper-side HBM pass on a memory-bound kernel).
    if state.dtype not in (jnp.float32, jnp.bfloat16):
        state = state.astype(jnp.float32)
    s_item = state.dtype.itemsize

    budget = _vmem_budget_bytes()

    # Resident set, counted at 2x (the implicit pipeline double-buffers even
    # constant-index blocks), using padded VMEM shapes.
    resident_bytes = 2 * (
        _vmem_tile_bytes(*params["w1"].shape, 2)
        + _vmem_tile_bytes(*params["w2"].shape, 2)
        + _vmem_tile_bytes(*params["wh"].shape, 2)
        + _vmem_tile_bytes(*params["b1"].shape, 4)
        + _vmem_tile_bytes(*params["b2"].shape, 4)
        + _vmem_tile_bytes(*params["bh"].shape, 4)
        + _vmem_tile_bytes(*params["lo"].shape, 4)
        + _vmem_tile_bytes(*params["hi"].shape, 4)
    )
    # Per-batch-row bytes: double-buffered state tile (lane-padded to 128),
    # double-buffered bf16 output slab, f32 h1/h2/heads temporaries + one bf16
    # operand copy; 1.25x slack for layout / regalloc.
    per_row = (2 * _round_up(S, LANE) * s_item
               + 2 * OUT_pad * 2
               + 2 * H_pad * 4 + H_pad * 2
               + OUT_pad * 4)
    per_row = int(per_row * 1.25)

    tb_cap = (budget - resident_bytes - (2 << 20)) // per_row
    tb_cap = max(SUBLANE, (tb_cap // SUBLANE) * SUBLANE)
    tb = min(_round_up(int(block_batch), SUBLANE), _round_up(B, SUBLANE), tb_cap)
    grid = (pl.cdiv(B, tb),)  # ragged last block is masked by Pallas

    def resident(shape):
        # Constant block index -> tile stays VMEM-resident across grid steps.
        return pl.BlockSpec(shape, lambda i: (0, 0))

    in_specs = [
        pl.BlockSpec((tb, S), lambda i: (i, 0)),   # streamed state tile
        resident(params["w1"].shape),
        resident(params["b1"].shape),
        resident(params["w2"].shape),
        resident(params["b2"].shape),
        resident(params["wh"].shape),
        resident(params["bh"].shape),
        resident(params["lo"].shape),
        resident(params["hi"].shape),
    ]
    out_spec = pl.BlockSpec((tb, OUT_pad), lambda i: (i, 0))

    out = pl.pallas_call(
        _actor_fused_kernel,
        out_shape=jax.ShapeDtypeStruct((B, OUT_pad), jnp.bfloat16),
        grid=grid,
        in_specs=in_specs,
        out_specs=out_spec,
        compiler_params=pltpu.CompilerParams(
            dimension_semantics=("parallel",),   # independent batch rows -> megacore
            vmem_limit_bytes=int(budget),
        ),
    )(state, params["w1"], params["b1"], params["w2"], params["b2"],
      params["wh"], params["bh"], params["lo"], params["hi"])

    # Padded slab columns (>= 2*action_dim) are pass-through zeros and are
    # sliced away here (documented invariant).
    mean = out[:, :action_dim].astype(jnp.float32)
    log_std = out[:, action_dim:2 * action_dim].astype(jnp.float32)
    return mean, log_std


def init_actor_params(key, state_dim, action_dim, hidden_dim):
    """PyTorch-Linear-style init (uniform +-1/sqrt(fan_in)), (in, out) layout."""
    def linear(k, fan_in, fan_out):
        kw, kb = jax.random.split(k)
        bound = 1.0 / jnp.sqrt(fan_in)
        w = jax.random.uniform(kw, (fan_in, fan_out), jnp.float32, -bound, bound)
        b = jax.random.uniform(kb, (1, fan_out), jnp.float32, -bound, bound)
        return w, b

    k1, k2, k3, k4 = jax.random.split(key, 4)
    w1, b1 = linear(k1, state_dim, hidden_dim)
    w2, b2 = linear(k2, hidden_dim, hidden_dim)
    wm, bm = linear(k3, hidden_dim, action_dim)
    ws, bs = linear(k4, hidden_dim, action_dim)
    return {"w1": w1, "b1": b1, "w2": w2, "b2": b2,
            "wm": wm, "bm": bm, "ws": ws, "bs": bs}


def pack_actor_params(raw):
    """One-time pad/pack:
      * hidden -> multiple of 128 lanes; heads fused into one (hidden_pad, 128k)
        slab [Wm | Ws | zeros].  Zero padding is exact (ReLU(0)=0).
      * matmul weights stored bf16 (MXU operands; f32 accumulation in-kernel),
        biases stay f32 (added after the dot).
      * lo/hi clamp row vectors for the fused head epilogue.
    """
    state_dim, hidden_dim = raw["w1"].shape
    action_dim = raw["wm"].shape[1]
    h_pad = _round_up(hidden_dim, LANE)
    out_pad = _round_up(2 * action_dim, LANE)

    def pad2(a, rows, cols):
        return jnp.pad(a, ((0, rows - a.shape[0]), (0, cols - a.shape[1])))

    col = jnp.arange(out_pad)
    is_log_std = (col >= action_dim) & (col < 2 * action_dim)
    lo = jnp.where(is_log_std, LOG_STD_MIN, -jnp.inf).astype(jnp.float32)[None, :]
    hi = jnp.where(is_log_std, LOG_STD_MAX, jnp.inf).astype(jnp.float32)[None, :]

    return {
        "w1": pad2(raw["w1"], state_dim, h_pad).astype(jnp.bfloat16),
        "b1": pad2(raw["b1"], 1, h_pad),
        "w2": pad2(raw["w2"], h_pad, h_pad).astype(jnp.bfloat16),
        "b2": pad2(raw["b2"], 1, h_pad),
        "wh": pad2(jnp.concatenate([raw["wm"], raw["ws"]], axis=1),
                   h_pad, out_pad).astype(jnp.bfloat16),
        "bh": pad2(jnp.concatenate([raw["bm"], raw["bs"]], axis=1), 1, out_pad),
        "lo": lo,
        "hi": hi,
    }


# TODO(synk): get_action's Normal rsample / tanh-squash log_prob path and the
# critic1/critic2/value heads are not exercised by forward(); only forward() is
# implemented as a Pallas kernel.


def _reference_forward(state, p):
    h1 = jnp.maximum(state @ p["w1"] + p["b1"], 0.0)
    h2 = jnp.maximum(h1 @ p["w2"] + p["b2"], 0.0)
    mean = h2 @ p["wm"] + p["bm"]
    log_std = jnp.clip(h2 @ p["ws"] + p["bs"], LOG_STD_MIN, LOG_STD_MAX)
    return mean, log_std


if __name__ == "__main__":
    key = jax.random.PRNGKey(0)
    k_params, k_state = jax.random.split(key)

    # Small shapes consistent with the module: state vec -> (mean, log_std).
    batch, state_dim, action_dim, hidden_dim = 8, 16, 4, 32

    raw = init_actor_params(k_params, state_dim, action_dim, hidden_dim)
    packed = pack_actor_params(raw)
    state = jax.random.normal(k_state, (batch, state_dim), jnp.float32)

    mean, log_std = actor_critic_forward(state, packed, action_dim=action_dim)
    jax.block_until_ready((mean, log_std))

    # Sanity check against plain-JAX f32 reference on the unpadded params.
    # bf16 MXU operands + bf16 output slab -> looser tolerance than pure f32.
    ref_mean, ref_log_std = _reference_forward(state, raw)
    assert mean.shape == (batch, action_dim) and log_std.shape == (batch, action_dim)
    assert jnp.allclose(mean, ref_mean, atol=5e-2, rtol=5e-2), "mean mismatch"
    assert jnp.allclose(log_std, ref_log_std, atol=5e-2, rtol=5e-2), "log_std mismatch"

    print("KERNEL_OK")
</pallas_src>

<mosaic_0001>
module attributes {stable_mosaic.version = 11 : i64} {
  func.func @_actor_fused_kernel(%arg0: i32, %arg1: memref<8x16xf32, #tpu.memory_space<vmem>>, %arg2: memref<16x128xbf16, #tpu.memory_space<vmem>>, %arg3: memref<1x128xf32, #tpu.memory_space<vmem>>, %arg4: memref<128x128xbf16, #tpu.memory_space<vmem>>, %arg5: memref<1x128xf32, #tpu.memory_space<vmem>>, %arg6: memref<128x128xbf16, #tpu.memory_space<vmem>>, %arg7: memref<1x128xf32, #tpu.memory_space<vmem>>, %arg8: memref<1x128xf32, #tpu.memory_space<vmem>>, %arg9: memref<1x128xf32, #tpu.memory_space<vmem>>, %arg10: memref<8x128xbf16, #tpu.memory_space<vmem>>) attributes {dimension_semantics = [#tpu.dimension_semantics<parallel>], iteration_bounds = array<i64: 1>, scalar_prefetch = 0 : i64, scratch_operands = 0 : i64, tpu.core_type = #tpu.core_type<tc>, window_params = [{transform_indices = @transform_0, window_bounds = array<i64: 8, 16>}, {pipeline_mode = #tpu.pipeline_mode<synchronous>, transform_indices = @transform_1, window_bounds = array<i64: 16, 128>}, {pipeline_mode = #tpu.pipeline_mode<synchronous>, transform_indices = @transform_2, window_bounds = array<i64: 1, 128>}, {pipeline_mode = #tpu.pipeline_mode<synchronous>, transform_indices = @transform_3, window_bounds = array<i64: 128, 128>}, {pipeline_mode = #tpu.pipeline_mode<synchronous>, transform_indices = @transform_4, window_bounds = array<i64: 1, 128>}, {pipeline_mode = #tpu.pipeline_mode<synchronous>, transform_indices = @transform_5, window_bounds = array<i64: 128, 128>}, {pipeline_mode = #tpu.pipeline_mode<synchronous>, transform_indices = @transform_6, window_bounds = array<i64: 1, 128>}, {pipeline_mode = #tpu.pipeline_mode<synchronous>, transform_indices = @transform_7, window_bounds = array<i64: 1, 128>}, {pipeline_mode = #tpu.pipeline_mode<synchronous>, transform_indices = @transform_8, window_bounds = array<i64: 1, 128>}, {transform_indices = @transform_9, window_bounds = array<i64: 8, 128>}]} {
    %c0 = arith.constant 0 : index
    %c0_0 = arith.constant 0 : index
    %0 = vector.load %arg1[%c0, %c0_0] : memref<8x16xf32, #tpu.memory_space<vmem>>, vector<8x16xf32>
    %1 = arith.truncf %0 : vector<8x16xf32> to vector<8x16xbf16>
    %c0_1 = arith.constant 0 : index
    %c0_2 = arith.constant 0 : index
    %2 = vector.load %arg2[%c0_1, %c0_2] : memref<16x128xbf16, #tpu.memory_space<vmem>>, vector<16x128xbf16>
    %cst = arith.constant dense<0.000000e+00> : vector<8x128xf32>
    %3 = tpu.matmul %1, %2, %cst {dimension_numbers = #tpu.dot_dimension_numbers<[1], [0], [0], [1], [0, 0, 1, 1], [], []>} : vector<8x16xbf16>, vector<16x128xbf16>, vector<8x128xf32> -> vector<8x128xf32>
    %c0_3 = arith.constant 0 : index
    %c0_4 = arith.constant 0 : index
    %4 = vector.load %arg3[%c0_3, %c0_4] : memref<1x128xf32, #tpu.memory_space<vmem>>, vector<1x128xf32>
    %5 = vector.broadcast %4 : vector<1x128xf32> to vector<8x128xf32>
    %6 = arith.addf %3, %5 : vector<8x128xf32>
    %cst_5 = arith.constant 0.000000e+00 : f32
    %7 = vector.broadcast %cst_5 : f32 to vector<8x128xf32>
    %8 = arith.maximumf %6, %7 : vector<8x128xf32>
    %9 = arith.truncf %8 : vector<8x128xf32> to vector<8x128xbf16>
    %c0_6 = arith.constant 0 : index
    %c0_7 = arith.constant 0 : index
    %10 = vector.load %arg4[%c0_6, %c0_7] : memref<128x128xbf16, #tpu.memory_space<vmem>>, vector<128x128xbf16>
    %cst_8 = arith.constant dense<0.000000e+00> : vector<8x128xf32>
    %11 = tpu.matmul %9, %10, %cst_8 {dimension_numbers = #tpu.dot_dimension_numbers<[1], [0], [0], [1], [0, 0, 1, 1], [], []>} : vector<8x128xbf16>, vector<128x128xbf16>, vector<8x128xf32> -> vector<8x128xf32>
    %c0_9 = arith.constant 0 : index
    %c0_10 = arith.constant 0 : index
    %12 = vector.load %arg5[%c0_9, %c0_10] : memref<1x128xf32, #tpu.memory_space<vmem>>, vector<1x128xf32>
    %13 = vector.broadcast %12 : vector<1x128xf32> to vector<8x128xf32>
    %14 = arith.addf %11, %13 : vector<8x128xf32>
    %cst_11 = arith.constant 0.000000e+00 : f32
    %15 = vector.broadcast %cst_11 : f32 to vector<8x128xf32>
    %16 = arith.maximumf %14, %15 : vector<8x128xf32>
    %17 = arith.truncf %16 : vector<8x128xf32> to vector<8x128xbf16>
    %c0_12 = arith.constant 0 : index
    %c0_13 = arith.constant 0 : index
    %18 = vector.load %arg6[%c0_12, %c0_13] : memref<128x128xbf16, #tpu.memory_space<vmem>>, vector<128x128xbf16>
    %cst_14 = arith.constant dense<0.000000e+00> : vector<8x128xf32>
    %19 = tpu.matmul %17, %18, %cst_14 {dimension_numbers = #tpu.dot_dimension_numbers<[1], [0], [0], [1], [0, 0, 1, 1], [], []>} : vector<8x128xbf16>, vector<128x128xbf16>, vector<8x128xf32> -> vector<8x128xf32>
    %c0_15 = arith.constant 0 : index
    %c0_16 = arith.constant 0 : index
    %20 = vector.load %arg7[%c0_15, %c0_16] : memref<1x128xf32, #tpu.memory_space<vmem>>, vector<1x128xf32>
    %21 = vector.broadcast %20 : vector<1x128xf32> to vector<8x128xf32>
    %22 = arith.addf %19, %21 : vector<8x128xf32>
    %c0_17 = arith.constant 0 : index
    %c0_18 = arith.constant 0 : index
    %23 = vector.load %arg8[%c0_17, %c0_18] : memref<1x128xf32, #tpu.memory_space<vmem>>, vector<1x128xf32>
    %24 = vector.broadcast %23 : vector<1x128xf32> to vector<8x128xf32>
    %25 = arith.maximumf %22, %24 : vector<8x128xf32>
    %c0_19 = arith.constant 0 : index
    %c0_20 = arith.constant 0 : index
    %26 = vector.load %arg9[%c0_19, %c0_20] : memref<1x128xf32, #tpu.memory_space<vmem>>, vector<1x128xf32>
    %27 = vector.broadcast %26 : vector<1x128xf32> to vector<8x128xf32>
    %28 = arith.minimumf %25, %27 : vector<8x128xf32>
    %29 = arith.truncf %28 : vector<8x128xf32> to vector<8x128xbf16>
    %c0_21 = arith.constant 0 : index
    %c0_22 = arith.constant 0 : index
    %30 = vector.load %arg10[%c0_21, %c0_22] : memref<8x128xbf16, #tpu.memory_space<vmem>>, vector<8x128xbf16>
    tpu.vector_store %arg10[%c0_21, %c0_22], %29 {strides = array<i32>} : memref<8x128xbf16, #tpu.memory_space<vmem>>, vector<8x128xbf16>,
    return
  }
  func.func @transform_0(%arg0: i32) -> (i32, i32) {
    %c0_i32 = arith.constant 0 : i32
    %c0_i32_0 = arith.constant 0 : i32
    return %arg0, %c0_i32 : i32, i32
  }
  func.func @transform_1(%arg0: i32) -> (i32, i32) {
    %c0_i32 = arith.constant 0 : i32
    %c0_i32_0 = arith.constant 0 : i32
    %c0_i32_1 = arith.constant 0 : i32
    return %c0_i32, %c0_i32_0 : i32, i32
  }
  func.func @transform_2(%arg0: i32) -> (i32, i32) {
    %c0_i32 = arith.constant 0 : i32
    %c0_i32_0 = arith.constant 0 : i32
    %c0_i32_1 = arith.constant 0 : i32
    return %c0_i32, %c0_i32_0 : i32, i32
  }
  func.func @transform_3(%arg0: i32) -> (i32, i32) {
    %c0_i32 = arith.constant 0 : i32
    %c0_i32_0 = arith.constant 0 : i32
    %c0_i32_1 = arith.constant 0 : i32
    return %c0_i32, %c0_i32_0 : i32, i32
  }
  func.func @transform_4(%arg0: i32) -> (i32, i32) {
    %c0_i32 = arith.constant 0 : i32
    %c0_i32_0 = arith.constant 0 : i32
    %c0_i32_1 = arith.constant 0 : i32
    return %c0_i32, %c0_i32_0 : i32, i32
  }
  func.func @transform_5(%arg0: i32) -> (i32, i32) {
    %c0_i32 = arith.constant 0 : i32
    %c0_i32_0 = arith.constant 0 : i32
    %c0_i32_1 = arith.constant 0 : i32
    return %c0_i32, %c0_i32_0 : i32, i32
  }
  func.func @transform_6(%arg0: i32) -> (i32, i32) {
    %c0_i32 = arith.constant 0 : i32
    %c0_i32_0 = arith.constant 0 : i32
    %c0_i32_1 = arith.constant 0 : i32
    return %c0_i32, %c0_i32_0 : i32, i32
  }
  func.func @transform_7(%arg0: i32) -> (i32, i32) {
    %c0_i32 = arith.constant 0 : i32
    %c0_i32_0 = arith.constant 0 : i32
    %c0_i32_1 = arith.constant 0 : i32
    return %c0_i32, %c0_i32_0 : i32, i32
  }
  func.func @transform_8(%arg0: i32) -> (i32, i32) {
    %c0_i32 = arith.constant 0 : i32
    %c0_i32_0 = arith.constant 0 : i32
    %c0_i32_1 = arith.constant 0 : i32
    return %c0_i32, %c0_i32_0 : i32, i32
  }
  func.func @transform_9(%arg0: i32) -> (i32, i32) {
    %c0_i32 = arith.constant 0 : i32
    %c0_i32_0 = arith.constant 0 : i32
    return %arg0, %c0_i32 : i32, i32
  }
}

</mosaic_0001>

<bundles_post_ra>
// kernel: actor_critic_forward.1
= control target key start
LH: loop header
LB: loop body
LE: loop exit
PB: predicated region body
PF: predicated region fallthrough
CT: control target
= control target key end

     0   :  { %14 = vsyncpa [#allocation3], 0  ;;  %s780_s0 = inlined_call_operand.hbm [shape: f32[8,16], index: 0, kind: input, shape index: {}]   ;;  %s781_s1 = inlined_call_operand.vmem [shape: bf16[16,128], index: 1, kind: input, shape index: {}]   ;;  %s782_s2 = inlined_call_operand.vmem [shape: f32[1,128], index: 2, kind: input, shape index: {}]   ;;  %s783_s3 = inlined_call_operand.hbm [shape: bf16[128,128], index: 3, kind: input, shape index: {}]   ;;  %s784_s4 = inlined_call_operand.vmem [shape: f32[1,128], index: 4, kind: input, shape index: {}]   ;;  %s785_s5 = inlined_call_operand.hbm [shape: bf16[128,128], index: 5, kind: input, shape index: {}]   ;;  %s786_s6 = inlined_call_operand.hbm [shape: f32[1,128], index: 6, kind: input, shape index: {}]   ;;  %s787_s7 = inlined_call_operand.hbm [shape: f32[1,128], index: 7, kind: input, shape index: {}]   ;;  %s788_s8 = inlined_call_operand.hbm [shape: f32[1,128], index: 8, kind: input, shape index: {}]   ;;  %s789_s9 = inlined_call_operand.vmem [shape: bf16[8,128], index: 9, kind: output, shape index: {}]  }
   0x1   :  { %15 = vsyncpa [#allocation5], 0 }
   0x2   :  { %16 = vsyncpa [#allocation8], 0 }
   0x3   :  { %17 = vsyncpa [#allocation11], 0  ;;  %s664_s30 = smov [#allocation4]  }
   0x4   :  { %s37_s10 = sshll.u32 %s664_s30, 4  ;;  %s38_s10 = int_to_ptr.vmem [resolvable:$true] %s37_s10 }
   0x5   :  { %s544_s11 = scalar_lea.vmem %s38_s10, 1024  ;;  %p549_p1 = scmp.lt.s32.totalorder %s38_s10, %s38_s10 }
   0x6   :  { %p545_p0 = scmp.ne.s32.totalorder %s38_s10, %s544_s11  ;;  %p550_p2 = scmp.lt.s32.totalorder %s544_s11, %s544_s11 }
   0x8   :  { %p551_p3 = por %p550_p2, %p549_p1 }
   0xa   :  { %p552_p4 = pnand %p551_p3, %p545_p0 }
   0xc   :  { %555 = shalt.err (!%p552_p4)
}
   0xd   :  { %s665_s12 = smov 64   ;;  %s666_s13 = smov 4  }
   0xe   :  { %43 = dma.hbm_to_vmem [thread:$0]  %s783_s3, 1024, %s38_s10, [#allocation5], %s665_s12, %s665_s12, %s666_s13  }
   0xf   :  { %s667_s16 = smov [#allocation7]   ;;  %s668_s18 = smov [#allocation2]  }
  0x10   :  { %s64_s17 = sshll.u32 %s667_s16, 4  ;;  %s24_s19 = sshll.u32 %s668_s18, 4  ;;  %s65_s17 = int_to_ptr.vmem [resolvable:$true] %s64_s17  ;;  %s25_s19 = int_to_ptr.vmem [resolvable:$true] %s24_s19 }
  0x11   :  { %s564_s20 = scalar_lea.vmem %s65_s17, 16  ;;  %s568_s21 = scalar_lea.vmem %s65_s17, 32 }
  0x12   :  { %p565_p5 = scmp.ne.s32.totalorder %s65_s17, %s564_s20  ;;  %p569_p6 = scmp.lt.s32.totalorder %s65_s17, %s65_s17 }
  0x13   :  { %p570_p7 = scmp.lt.s32.totalorder %s568_s21, %s564_s20 }
  0x15   :  { %p571_p8 = por %p570_p7, %p569_p6 }
  0x17   :  { %p572_p9 = pnand %p571_p8, %p565_p5 }
  0x19   :  { %575 = shalt.err (!%p572_p9)
}
  0x1a   :  { %67 = dma.hbm_to_vmem [thread:$0]  %s786_s6, 16, %s65_s17, [#allocation8]  }
  0x1b   :  { %s584_s24 = scalar_lea.vmem %s25_s19, 128  ;;  %p589_p11 = scmp.lt.s32.totalorder %s25_s19, %s25_s19 }
  0x1c   :  { %p585_p10 = scmp.ne.s32.totalorder %s25_s19, %s584_s24  ;;  %p590_p12 = scmp.lt.s32.totalorder %s584_s24, %s584_s24 }
  0x1e   :  { %p591_p13 = por %p590_p12, %p589_p11 }
  0x20   :  { %p592_p0 = pnand %p591_p13, %p585_p10 }
  0x22   :  { %595 = shalt.err (!%p592_p0)
}
  0x23   :  { %27 = dma.hbm_to_vmem [thread:$0]  %s780_s0, 128, %s25_s19, [#allocation3]  }
  0x24   :  { %s669_s26 = smov [#allocation6]   ;;  %s670_s28 = smov [#allocation9]  }
  0x25   :  { %s51_s27 = sshll.u32 %s669_s26, 4  ;;  %s74_s29 = sshll.u32 %s670_s28, 4  ;;  %s52_s27 = int_to_ptr.vmem [resolvable:$true] %s51_s27  ;;  %s75_s29 = int_to_ptr.vmem [resolvable:$true] %s74_s29 }
  0x26   :  { %s604_s30 = scalar_lea.vmem %s52_s27, 1024  ;;  %p609_p2 = scmp.lt.s32.totalorder %s52_s27, %s52_s27 }
  0x27   :  { %p605_p1 = scmp.ne.s32.totalorder %s52_s27, %s604_s30  ;;  %p610_p3 = scmp.lt.s32.totalorder %s604_s30, %s604_s30 }
  0x29   :  { %p611_p4 = por %p610_p3, %p609_p2 }
  0x2b   :  { %p612_p5 = pnand %p611_p4, %p605_p1 }
  0x2d   :  { %615 = shalt.err (!%p612_p5)
}
  0x2e   :  { %57 = dma.hbm_to_vmem [thread:$0]  %s785_s5, 1024, %s52_s27, [#allocation5], %s665_s12, %s665_s12, %s666_s13  }
  0x2f   :  { %s624_s0 = scalar_lea.vmem %s75_s29, 16  ;;  %s628_s11 = scalar_lea.vmem %s75_s29, 32 }
  0x30   :  { %p625_p6 = scmp.ne.s32.totalorder %s75_s29, %s624_s0  ;;  %p629_p7 = scmp.lt.s32.totalorder %s75_s29, %s75_s29 }
  0x31   :  { %p630_p8 = scmp.lt.s32.totalorder %s628_s11, %s624_s0 }
  0x33   :  { %p631_p9 = por %p630_p8, %p629_p7 }
  0x35   :  { %p632_p10 = pnand %p631_p9, %p625_p6 }
  0x37   :  { %635 = shalt.err (!%p632_p10)
}
  0x38   :  { %77 = dma.hbm_to_vmem [thread:$0]  %s787_s7, 16, %s75_s29, [#allocation8]  }
  0x39   :  { %s671_s16 = smov [#allocation10]  }
  0x3a   :  { %s84_s17 = sshll.u32 %s671_s16, 4  ;;  %s85_s17 = int_to_ptr.vmem [resolvable:$true] %s84_s17 }
  0x3b   :  { %s644_s18 = scalar_lea.vmem %s85_s17, 16  ;;  %s648_s19 = scalar_lea.vmem %s85_s17, 32 }
  0x3c   :  { %p645_p11 = scmp.ne.s32.totalorder %s85_s17, %s644_s18  ;;  %p649_p12 = scmp.lt.s32.totalorder %s85_s17, %s85_s17 }
  0x3d   :  { %p650_p13 = scmp.lt.s32.totalorder %s648_s19, %s644_s18 }
  0x3f   :  { %p651_p0 = por %p650_p13, %p649_p12 }
  0x41   :  { %p652_p1 = pnand %p651_p0, %p645_p11 }
  0x43   :  { %655 = shalt.err (!%p652_p1)
}
  0x44   :  { %87 = dma.hbm_to_vmem [thread:$0]  %s788_s8, 16, %s85_s17, [#allocation11]  }
  0x45   :  { %656 = dma.done.wait [#allocation3], 128  }
  0x46   :  { %657 = vsyncadd [#allocation3], 4294967168 }
  0x47   :  { %658 = dma.done.wait [#allocation5], 2048  }
  0x48   :  { %659 = vsyncadd [#allocation5], 4294965248 }
  0x49   :  { %660 = dma.done.wait [#allocation8], 32  }
  0x4a   :  { %661 = vsyncadd [#allocation8], 4294967264 }
  0x4b   :  { %662 = dma.done.wait [#allocation11], 16  }
  0x4c   :  { %663 = vsyncadd [#allocation11], 4294967280  ;;  %v672_v0 = vmov 0.0   ;;  %vm673_vm0 = vmmov 0   ;;  %v519_v1 = vld [vmem:[%s781_s1] sm:$0xff]   ;;  %vm124_vm1 = vcmask 130048  }
  0x4d   :  { %463 = vmatprep.subr.bf16.mxu0 %v672_v0  ;;  %465 = vmatprep.mubr.msk.bf16.mxu0 %vm673_vm0, %v672_v0  ;;  %v107_v2 = vld [vmem:[#allocation2] sm:$0xff]  ;;  %v521_v5 = vld [vmem:[#allocation4 + $0x30] sm:$0xff]   ;;  %v522_v6 = vld [vmem:[#allocation4 + $0x28] sm:$0xff]  }
  0x4e   :  { %469 = vmatprep.subr.bf16.mxu1 %v672_v0  ;;  %485 = vmatprep.mubr.msk.bf16.mxu1 %vm673_vm0, %v672_v0  ;;  %v108_v3 = vpack.c.bf16 %v107_v2, %v107_v2  ;;  %v520_v4 = vld [vmem:[#allocation4 + $0x38] sm:$0xff]   ;;  %v523_v7 = vld [vmem:[#allocation4 + $0x20] sm:$0xff]   ;;  %v525_v9 = vld [vmem:[#allocation4 + $0x10] sm:$0xff]  }
  0x4f   :  { %464 = vmatpush3.bf16.msra.mxu0 %v519_v1  ;;  %470 = vmatpush3.bf16.msra.mxu1 %v520_v4  ;;  %v524_v8 = vld [vmem:[#allocation4 + $0x18] sm:$0xff]   ;;  %v526_v10 = vld [vmem:[#allocation4 + $0x8] sm:$0xff]   ;;  %v527_v11 = vld [vmem:[#allocation4] sm:$0xff]  }
  0x50   :  { %489 = vmatprep.subr.bf16.mxu0 %v672_v0  ;;  %471 = vmatprep.subr.bf16.mxu1 %v672_v0  ;;  %v528_v12 = vld [vmem:[#allocation6 + $0x38] sm:$0xff]   ;;  %v529_v13 = vld [vmem:[#allocation6 + $0x30] sm:$0xff]   ;;  %v530_v14 = vld [vmem:[#allocation6 + $0x28] sm:$0xff]  }
  0x51   :  { %v531_v15 = vld [vmem:[#allocation6 + $0x20] sm:$0xff]   ;;  %v532_v16 = vld [vmem:[#allocation6 + $0x18] sm:$0xff]   ;;  %v533_v17 = vld [vmem:[#allocation6 + $0x10] sm:$0xff]  }
  0x52   :  { %466 = vmatmul.mubr.msk.bf16.vlgmr.msra.gmra.mxu0 %vm124_vm1, %v108_v3  ;;  %v420_v18 = vld [vmem:[%s782_s2] ss:$0 sm:$0xff]  ;;  %v534_v26 = vld [vmem:[#allocation6 + $0x8] sm:$0xff]   ;;  %v535_v27 = vld [vmem:[#allocation6] sm:$0xff]  }
  0x53   :  { %505 = vmatprep.mubr.msk.bf16.mxu0 %vm673_vm0, %v672_v0  ;;  %472 = vmatpush3.bf16.msra.mxu1 %v521_v5  ;;  %v423_v28 = vld [vmem:[%s784_s4] ss:$0 sm:$0xff]  ;;  %v432_v36 = vld [vmem:[#allocation7] ss:$0 sm:$0xff]  ;;  %v441_v38 = vld [vmem:[#allocation9] ss:$0 sm:$0xff] }
  0x54   :  { %473 = vmatprep.subr.bf16.mxu1 %v672_v0  ;;  %490 = vmatpush3.bf16.msra.mxu0 %v528_v12  ;;  %v442_v40 = vld [vmem:[#allocation10] ss:$0 sm:$0xff] }
  0x55   :  { %491 = vmatprep.subr.bf16.mxu0 %v672_v0 }
  0x57   :  { %474 = vmatpush3.bf16.msra.mxu1 %v522_v6 }
  0x58   :  { %475 = vmatprep.subr.bf16.mxu1 %v672_v0  ;;  %492 = vmatpush3.bf16.msra.mxu0 %v529_v13 }
  0x59   :  { %493 = vmatprep.subr.bf16.mxu0 %v672_v0 }
  0x5b   :  { %476 = vmatpush3.bf16.msra.mxu1 %v523_v7 }
  0x5c   :  { %477 = vmatprep.subr.bf16.mxu1 %v672_v0  ;;  %494 = vmatpush3.bf16.msra.mxu0 %v530_v14 }
  0x5d   :  { %495 = vmatprep.subr.bf16.mxu0 %v672_v0 }
  0x5f   :  { %478 = vmatpush3.bf16.msra.mxu1 %v524_v8 }
  0x60   :  { %479 = vmatprep.subr.bf16.mxu1 %v672_v0  ;;  %496 = vmatpush3.bf16.msra.mxu0 %v531_v15 }
  0x61   :  { %497 = vmatprep.subr.bf16.mxu0 %v672_v0 }
  0x63   :  { %480 = vmatpush3.bf16.msra.mxu1 %v525_v9 }
  0x64   :  { %481 = vmatprep.subr.bf16.mxu1 %v672_v0  ;;  %498 = vmatpush3.bf16.msra.mxu0 %v532_v16 }
  0x65   :  { %499 = vmatprep.subr.bf16.mxu0 %v672_v0 }
  0x67   :  { %482 = vmatpush3.bf16.msra.mxu1 %v526_v10 }
  0x68   :  { %483 = vmatprep.subr.bf16.mxu1 %v672_v0  ;;  %500 = vmatpush3.bf16.msra.mxu0 %v533_v17 }
  0x69   :  { %501 = vmatprep.subr.bf16.mxu0 %v672_v0 }
  0x6b   :  { %484 = vmatpush3.bf16.msra.mxu1 %v527_v11 }
  0x6c   :  { %502 = vmatpush3.bf16.msra.mxu0 %v534_v26 }
  0x6d   :  { %503 = vmatprep.subr.bf16.mxu0 %v672_v0 }
  0x70   :  { %504 = vmatpush3.bf16.msra.mxu0 %v535_v27 }
 0x112   :  { %v162_v19 = vpop.f32.mrf.mxu0 }
 0x113   :  { %v163_v20 = vadd.f32 %v420_v18, %v162_v19 }
 0x114   :  { %v467_v21 = vpop.f32.mrf.mxu0 }
 0x115   :  { %v168_v22 = vmax.f32 %v163_v20, 0.0 }
 0x116   :  { %v165_v23 = vpop.f32.mrf.mxu0 }
 0x117   :  { %v169_v24 = vpack.c.bf16 %v168_v22, %v168_v22 }
 0x118   :  { %v468_v25 = vpop.f32.mrf.mxu0 }
 0x119   :  { %486 = vmatmul.mubr.bf16.vlgmr.msra.gmra.mxu1 %v169_v24 }
 0x1d9   :  { %v275_v29 = vpop.f32.mrf.mxu1 }
 0x1da   :  { %v276_v30 = vadd.f32 %v423_v28, %v275_v29 }
 0x1db   :  { %v487_v31 = vpop.f32.mrf.mxu1 }
 0x1dc   :  { %v281_v32 = vmax.f32 %v276_v30, 0.0 }
 0x1dd   :  { %v278_v33 = vpop.f32.mrf.mxu1 }
 0x1de   :  { %v282_v34 = vpack.c.bf16 %v281_v32, %v281_v32 }
 0x1df   :  { %v488_v35 = vpop.f32.mrf.mxu1 }
 0x1e0   :  { %506 = vmatmul.mubr.bf16.vlgmr.msra.gmra.mxu0 %v282_v34 }
 0x2a0   :  { %v388_v37 = vpop.f32.mrf.mxu0 }
 0x2a1   :  { %v389_v39 = vadd.f32 %v432_v36, %v388_v37 }
 0x2a2   :  { %v507_v41 = vpop.f32.mrf.mxu0 }
 0x2a3   :  { %v401_v42 = vmax.f32 %v389_v39, %v441_v38 }
 0x2a4   :  { %v391_v43 = vpop.f32.mrf.mxu0 }
 0x2a5   :  { %v409_v44 = vmin.f32 %v401_v42, %v442_v40 }
 0x2a6   :  { %v508_v45 = vpop.f32.mrf.mxu0 }
 0x2a7   :  { %v410_v46 = vpack.c.bf16 %v409_v44, %v409_v44 }
 0x2a9   :  { %411 = vst [vmem:[%s789_s9] sm:$0xf] %v410_v46 }
 0x2aa   :  { %416 = vsyncpa [#allocation3], 1 }
 0x2ab   :  { %417 = vsyncpa [#allocation5], 1 }
 0x2ac   :  { %418 = vsyncpa [#allocation8], 1 }
 0x2ad   :  { %419 = vsyncpa [#allocation11], 1 }

</bundles_post_ra>
